<compile_context>
chip_gen: v5e
topology: v5e:2x2
jax: 0.10.0
libtpu: 0.0.40
codegen_flags: <defaults>
</compile_context>

<pallas_src>
import jax
import jax.numpy as jnp
from jax.experimental import pallas as pl
from jax.experimental.pallas import tpu as pltpu

KH, KW = 3, 3
STRIDE = 2
PAD = 2


def _conv_gemm_kernel(xt_ref, ct_ref, st_ref, b_ref, o_ref):
    """One batch element of the fused conv, everything on the MXU.

    xt_ref: (1, W, Cin*H)         bf16  image, width-major (transposed in wrapper)
    ct_ref: (KW, OW, W)           bf16  0/1 column-selection (stride + zero pad)
    st_ref: (KW, Cin*H, Cout*OH)  bf16  row-selection fused with conv weights
    b_ref : (1, Cout*OH)          f32   bias, broadcast over the OW sublanes
    o_ref : (1, OW, Cout*OH)      f32   lane axis = Cout*OH (widest natural axis)

      out[ow, c*OH+oh] = sum_kw ( C_kw^T @ X^T @ S_kw^T )[ow, c*OH+oh] + b[c]
    """
    xt = xt_ref[0]                                   # (W, Cin*H) bf16
    acc = None
    for kw in range(KW):                             # static 3-way unroll
        # Column taps: t[ow, ci*H+h] = x[ci, h, STRIDE*ow + kw - PAD]  (0 if OOB)
        t = jnp.dot(ct_ref[kw], xt, preferred_element_type=jnp.float32)
        # Row taps + channel/weight contraction in one GEMM (f32 accumulate).
        p = jnp.dot(t.astype(jnp.bfloat16), st_ref[kw],
                    preferred_element_type=jnp.float32)
        acc = p if acc is None else acc + p
    o_ref[0] = acc + b_ref[...]                      # (OW, Cout*OH) + (1, Cout*OH)


def _build_selection_operands(w_oihw, bias, H, W):
    """Precompute (in the wrapper, once) the selection/weight operands."""
    Cout, Cin, kh_sz, kw_sz = w_oihw.shape
    OH = (H + 2 * PAD - kh_sz) // STRIDE + 1
    OW = (W + 2 * PAD - kw_sz) // STRIDE + 1

    # Column selection (transposed): ct[kw, ow, w] = 1 iff w == STRIDE*ow + kw - PAD.
    # Out-of-range taps select nothing -> exact zero padding. 0/1 is exact in bf16.
    ow_i = jnp.arange(OW)[:, None]
    w_i = jnp.arange(W)[None, :]
    ct = jnp.stack(
        [(w_i == (STRIDE * ow_i + kw - PAD)).astype(jnp.bfloat16)
         for kw in range(kw_sz)],
        axis=0)                                             # (KW, OW, W)

    # Row selection fused with the conv weights:
    #   st[kw, ci*H + h, c*OH + oh] = w[c, ci, h - STRIDE*oh + PAD, kw]
    #                                 if 0 <= h - STRIDE*oh + PAD < KH else 0
    oh_i = jnp.arange(OH)[:, None]
    h_i = jnp.arange(H)[None, :]
    kh_idx = h_i - (STRIDE * oh_i - PAD)                    # (OH, H)
    valid = (kh_idx >= 0) & (kh_idx < kh_sz)
    kh_c = jnp.clip(kh_idx, 0, kh_sz - 1)
    s = w_oihw[:, :, kh_c, :]                               # (Cout, Cin, OH, H, KW)
    s = s * valid[None, None, :, :, None].astype(w_oihw.dtype)
    s = jnp.transpose(s, (4, 0, 2, 1, 3))                   # (KW, Cout, OH, Cin, H)
    s = s.reshape(kw_sz, Cout * OH, Cin * H)
    st = jnp.transpose(s, (0, 2, 1)).astype(jnp.bfloat16)   # (KW, Cin*H, Cout*OH)

    b2 = jnp.repeat(bias.astype(jnp.float32), OH).reshape(1, Cout * OH)
    return ct, st, b2, OH, OW


def conv2d_k3_s2_p2_pallas(x_nchw, w_oihw, bias):
    """Conv2d(k=3, stride=2, pad=2) matching PyTorch NCHW/OIHW semantics."""
    N, Cin, H, W = x_nchw.shape
    Cout = w_oihw.shape[0]

    ct, st, b2, OH, OW = _build_selection_operands(
        w_oihw.astype(jnp.float32), bias.astype(jnp.float32), H, W)

    # Image in width-major (N, W, Cin*H) layout as a bf16 MXU operand.
    xt = (jnp.transpose(x_nchw.astype(jnp.float32), (0, 3, 1, 2))
          .reshape(N, W, Cin * H)
          .astype(jnp.bfloat16))

    out_t = pl.pallas_call(
        _conv_gemm_kernel,
        out_shape=jax.ShapeDtypeStruct((N, OW, Cout * OH), jnp.float32),
        grid_spec=pltpu.PrefetchScalarGridSpec(
            num_scalar_prefetch=0,
            grid=(N,),
            in_specs=[
                pl.BlockSpec((1, W, Cin * H), lambda n: (n, 0, 0)),
                # Constant index_maps: selection/weight operands fetched once,
                # resident across grid steps.
                pl.BlockSpec((KW, OW, W), lambda n: (0, 0, 0)),
                pl.BlockSpec((KW, Cin * H, Cout * OH), lambda n: (0, 0, 0)),
                pl.BlockSpec((1, Cout * OH), lambda n: (0, 0)),
            ],
            out_specs=pl.BlockSpec((1, OW, Cout * OH), lambda n: (n, 0, 0)),
        ),
        # N=1 in the spec: no point pretending megacore parallelism helps here.
        compiler_params=pltpu.CompilerParams(dimension_semantics=("arbitrary",)),
    )(xt, ct, st, b2)

    # (N, OW, Cout*OH) -> (N, Cout, OH, OW): a few-KB XLA relayout in the wrapper.
    return jnp.transpose(out_t.reshape(N, OW, Cout, OH), (0, 2, 3, 1))


def model_forward(x1, w, bias):
    # Only channels 0..2 of the 32-channel conv are ever consumed by the
    # split([1,1,1]) / cat pattern -> compute just those 3 output channels.
    v3 = conv2d_k3_s2_p2_pallas(x1, w[:3], bias[:3])          # (N, 3, OH, OW)
    split_tensors = (v3[:, 0:1], v3[:, 1:2], v3[:, 2:3])
    concatenated_tensor = v3   # cat of the contiguous 1-channel splits = identity
    return concatenated_tensor, split_tensors


if __name__ == "__main__":
    key = jax.random.PRNGKey(0)
    k_x, k_w, k_b = jax.random.split(key, 3)

    # Small shapes consistent with the module (original input was 1x3x64x64).
    N, Cin, H, W = 2, 3, 16, 16
    Cout = 32

    x1 = jax.random.normal(k_x, (N, Cin, H, W), jnp.float32)
    w = jax.random.normal(k_w, (Cout, Cin, KH, KW), jnp.float32) * 0.1
    bias = jax.random.normal(k_b, (Cout,), jnp.float32) * 0.1

    concat_out, splits_out = jax.jit(model_forward)(x1, w, bias)
    jax.block_until_ready((concat_out, splits_out))

    # Cross-check the fused Pallas conv against XLA's conv (same NCHW/OIHW semantics).
    v1_ref = jax.lax.conv_general_dilated(
        x1, w, window_strides=(STRIDE, STRIDE),
        padding=((PAD, PAD), (PAD, PAD)),
        dimension_numbers=("NCHW", "OIHW", "NCHW"),
        precision=jax.lax.Precision.HIGHEST,
    ) + bias.reshape(1, Cout, 1, 1)
    OH, OW = v1_ref.shape[2], v1_ref.shape[3]

    assert concat_out.shape == (N, 3, OH, OW)
    assert all(s.shape == (N, 1, OH, OW) for s in splits_out)
    # bf16 MXU operands with f32 accumulation -> tolerance a bit above fp32-exact.
    assert jnp.allclose(concat_out, v1_ref[:, 0:3], rtol=2e-2, atol=2e-2)
    for i, s in enumerate(splits_out):
        assert jnp.allclose(s, v1_ref[:, i:i + 1], rtol=2e-2, atol=2e-2)

    print("KERNEL_OK")
</pallas_src>

<mosaic_0001>
module attributes {stable_mosaic.version = 11 : i64} {
  func.func @_conv_gemm_kernel(%arg0: i32, %arg1: memref<1x16x48xbf16, #tpu.memory_space<vmem>>, %arg2: memref<3x9x16xbf16, #tpu.memory_space<vmem>>, %arg3: memref<3x48x27xbf16, #tpu.memory_space<vmem>>, %arg4: memref<1x27xf32, #tpu.memory_space<vmem>>, %arg5: memref<1x9x27xf32, #tpu.memory_space<vmem>>) attributes {dimension_semantics = [#tpu.dimension_semantics<arbitrary>], iteration_bounds = array<i64: 2>, scalar_prefetch = 0 : i64, scratch_operands = 0 : i64, tpu.core_type = #tpu.core_type<tc>, window_params = [{transform_indices = @transform_0, window_bounds = array<i64: 1, 16, 48>}, {pipeline_mode = #tpu.pipeline_mode<synchronous>, transform_indices = @transform_1, window_bounds = array<i64: 3, 9, 16>}, {pipeline_mode = #tpu.pipeline_mode<synchronous>, transform_indices = @transform_2, window_bounds = array<i64: 3, 48, 27>}, {pipeline_mode = #tpu.pipeline_mode<synchronous>, transform_indices = @transform_3, window_bounds = array<i64: 1, 27>}, {transform_indices = @transform_4, window_bounds = array<i64: 1, 9, 27>}]} {
    %c0 = arith.constant 0 : index
    %c0_0 = arith.constant 0 : index
    %c0_1 = arith.constant 0 : index
    %0 = vector.load %arg1[%c0, %c0_0, %c0_1] : memref<1x16x48xbf16, #tpu.memory_space<vmem>>, vector<1x16x48xbf16>
    %1 = vector.shape_cast %0 : vector<1x16x48xbf16> to vector<16x48xbf16>
    %c0_2 = arith.constant 0 : index
    %c0_3 = arith.constant 0 : index
    %c0_4 = arith.constant 0 : index
    %2 = vector.load %arg2[%c0_2, %c0_3, %c0_4] : memref<3x9x16xbf16, #tpu.memory_space<vmem>>, vector<1x9x16xbf16>
    %3 = vector.shape_cast %2 : vector<1x9x16xbf16> to vector<9x16xbf16>
    %cst = arith.constant dense<0.000000e+00> : vector<9x48xf32>
    %4 = tpu.matmul %3, %1, %cst {dimension_numbers = #tpu.dot_dimension_numbers<[1], [0], [0], [1], [0, 0, 1, 1], [], []>} : vector<9x16xbf16>, vector<16x48xbf16>, vector<9x48xf32> -> vector<9x48xf32>
    %5 = arith.truncf %4 : vector<9x48xf32> to vector<9x48xbf16>
    %c0_5 = arith.constant 0 : index
    %c0_6 = arith.constant 0 : index
    %c0_7 = arith.constant 0 : index
    %6 = vector.load %arg3[%c0_5, %c0_6, %c0_7] : memref<3x48x27xbf16, #tpu.memory_space<vmem>>, vector<1x48x27xbf16>
    %7 = vector.shape_cast %6 : vector<1x48x27xbf16> to vector<48x27xbf16>
    %cst_8 = arith.constant dense<0.000000e+00> : vector<9x27xf32>
    %8 = tpu.matmul %5, %7, %cst_8 {dimension_numbers = #tpu.dot_dimension_numbers<[1], [0], [0], [1], [0, 0, 1, 1], [], []>} : vector<9x48xbf16>, vector<48x27xbf16>, vector<9x27xf32> -> vector<9x27xf32>
    %c1 = arith.constant 1 : index
    %c0_9 = arith.constant 0 : index
    %c0_10 = arith.constant 0 : index
    %9 = vector.load %arg2[%c1, %c0_9, %c0_10] : memref<3x9x16xbf16, #tpu.memory_space<vmem>>, vector<1x9x16xbf16>
    %10 = vector.shape_cast %9 : vector<1x9x16xbf16> to vector<9x16xbf16>
    %cst_11 = arith.constant dense<0.000000e+00> : vector<9x48xf32>
    %11 = tpu.matmul %10, %1, %cst_11 {dimension_numbers = #tpu.dot_dimension_numbers<[1], [0], [0], [1], [0, 0, 1, 1], [], []>} : vector<9x16xbf16>, vector<16x48xbf16>, vector<9x48xf32> -> vector<9x48xf32>
    %12 = arith.truncf %11 : vector<9x48xf32> to vector<9x48xbf16>
    %c1_12 = arith.constant 1 : index
    %c0_13 = arith.constant 0 : index
    %c0_14 = arith.constant 0 : index
    %13 = vector.load %arg3[%c1_12, %c0_13, %c0_14] : memref<3x48x27xbf16, #tpu.memory_space<vmem>>, vector<1x48x27xbf16>
    %14 = vector.shape_cast %13 : vector<1x48x27xbf16> to vector<48x27xbf16>
    %cst_15 = arith.constant dense<0.000000e+00> : vector<9x27xf32>
    %15 = tpu.matmul %12, %14, %cst_15 {dimension_numbers = #tpu.dot_dimension_numbers<[1], [0], [0], [1], [0, 0, 1, 1], [], []>} : vector<9x48xbf16>, vector<48x27xbf16>, vector<9x27xf32> -> vector<9x27xf32>
    %16 = arith.addf %8, %15 : vector<9x27xf32>
    %c2 = arith.constant 2 : index
    %c0_16 = arith.constant 0 : index
    %c0_17 = arith.constant 0 : index
    %17 = vector.load %arg2[%c2, %c0_16, %c0_17] : memref<3x9x16xbf16, #tpu.memory_space<vmem>>, vector<1x9x16xbf16>
    %18 = vector.shape_cast %17 : vector<1x9x16xbf16> to vector<9x16xbf16>
    %cst_18 = arith.constant dense<0.000000e+00> : vector<9x48xf32>
    %19 = tpu.matmul %18, %1, %cst_18 {dimension_numbers = #tpu.dot_dimension_numbers<[1], [0], [0], [1], [0, 0, 1, 1], [], []>} : vector<9x16xbf16>, vector<16x48xbf16>, vector<9x48xf32> -> vector<9x48xf32>
    %20 = arith.truncf %19 : vector<9x48xf32> to vector<9x48xbf16>
    %c2_19 = arith.constant 2 : index
    %c0_20 = arith.constant 0 : index
    %c0_21 = arith.constant 0 : index
    %21 = vector.load %arg3[%c2_19, %c0_20, %c0_21] : memref<3x48x27xbf16, #tpu.memory_space<vmem>>, vector<1x48x27xbf16>
    %22 = vector.shape_cast %21 : vector<1x48x27xbf16> to vector<48x27xbf16>
    %cst_22 = arith.constant dense<0.000000e+00> : vector<9x27xf32>
    %23 = tpu.matmul %20, %22, %cst_22 {dimension_numbers = #tpu.dot_dimension_numbers<[1], [0], [0], [1], [0, 0, 1, 1], [], []>} : vector<9x48xbf16>, vector<48x27xbf16>, vector<9x27xf32> -> vector<9x27xf32>
    %24 = arith.addf %16, %23 : vector<9x27xf32>
    %c0_23 = arith.constant 0 : index
    %c0_24 = arith.constant 0 : index
    %25 = vector.load %arg4[%c0_23, %c0_24] : memref<1x27xf32, #tpu.memory_space<vmem>>, vector<1x27xf32>
    %26 = vector.broadcast %25 : vector<1x27xf32> to vector<9x27xf32>
    %27 = arith.addf %24, %26 : vector<9x27xf32>
    %c0_25 = arith.constant 0 : index
    %c0_26 = arith.constant 0 : index
    %c0_27 = arith.constant 0 : index
    %28 = vector.load %arg5[%c0_25, %c0_26, %c0_27] : memref<1x9x27xf32, #tpu.memory_space<vmem>>, vector<1x9x27xf32>
    %29 = vector.shape_cast %28 : vector<1x9x27xf32> to vector<9x27xf32>
    %30 = vector.shape_cast %27 : vector<9x27xf32> to vector<1x9x27xf32>
    tpu.vector_store %arg5[%c0_25, %c0_26, %c0_27], %30 {strides = array<i32>} : memref<1x9x27xf32, #tpu.memory_space<vmem>>, vector<1x9x27xf32>,
    return
  }
  func.func @transform_0(%arg0: i32) -> (i32, i32, i32) {
    %c0_i32 = arith.constant 0 : i32
    %c0_i32_0 = arith.constant 0 : i32
    %c0_i32_1 = arith.constant 0 : i32
    return %arg0, %c0_i32, %c0_i32_0 : i32, i32, i32
  }
  func.func @transform_1(%arg0: i32) -> (i32, i32, i32) {
    %c0_i32 = arith.constant 0 : i32
    %c0_i32_0 = arith.constant 0 : i32
    %c0_i32_1 = arith.constant 0 : i32
    %c0_i32_2 = arith.constant 0 : i32
    return %c0_i32, %c0_i32_0, %c0_i32_1 : i32, i32, i32
  }
  func.func @transform_2(%arg0: i32) -> (i32, i32, i32) {
    %c0_i32 = arith.constant 0 : i32
    %c0_i32_0 = arith.constant 0 : i32
    %c0_i32_1 = arith.constant 0 : i32
    %c0_i32_2 = arith.constant 0 : i32
    return %c0_i32, %c0_i32_0, %c0_i32_1 : i32, i32, i32
  }
  func.func @transform_3(%arg0: i32) -> (i32, i32) {
    %c0_i32 = arith.constant 0 : i32
    %c0_i32_0 = arith.constant 0 : i32
    %c0_i32_1 = arith.constant 0 : i32
    return %c0_i32, %c0_i32_0 : i32, i32
  }
  func.func @transform_4(%arg0: i32) -> (i32, i32, i32) {
    %c0_i32 = arith.constant 0 : i32
    %c0_i32_0 = arith.constant 0 : i32
    %c0_i32_1 = arith.constant 0 : i32
    return %arg0, %c0_i32, %c0_i32_0 : i32, i32, i32
  }
}

</mosaic_0001>

<bundles_post_ra>
// kernel: model_forward.1
= control target key start
LH: loop header
LB: loop body
LE: loop exit
PB: predicated region body
PF: predicated region fallthrough
CT: control target
= control target key end

     0   :  { %s620_s15 = smov 0   ;;  %s689_s0 = inlined_call_operand.vmem [shape: bf16[2,16,48], index: 0, kind: input, shape index: {}]   ;;  %s690_s1 = inlined_call_operand.vmem [shape: bf16[3,9,16], index: 1, kind: input, shape index: {}]   ;;  %s691_s2 = inlined_call_operand.vmem [shape: bf16[3,48,27], index: 2, kind: input, shape index: {}]   ;;  %s692_s3 = inlined_call_operand.vmem [shape: f32[1,27], index: 3, kind: input, shape index: {}]   ;;  %s693_s4 = inlined_call_operand.vmem [shape: f32[2,9,27], index: 4, kind: output, shape index: {}]  }
   0x1 LB: > { %s478_s16 = sadd.s32 4294967295, %s593_s15   ;;  %p482_p0 = scmp.ge.s32.totalorder %s593_s15, 1  ;;  %s593_s15 = sphi %s620_s15, %s14_s15  }
   0x2   : > { %p162_p1 = scmp.lt.s32.totalorder %s593_s15, 3 }
   0x4   : > { %p163_p2 = pnand %p482_p0, %p162_p1 }
   0x5   : > { %p188_p3 = scmp.lt.s32.totalorder (!%p163_p2), %s478_s16, 1 }
   0x6   : > { %166 = sbr.rel (%p163_p2) target bundleno = 309 (0x135), region = 36 }
   0xb   : > { %s695_s16 = smov (!%p188_p3, %s478_s16), 1  ;;  %v489_v0 = vld [vmem:[%s690_s1] sm:$0xf]  ;;  %v566_v1 = vld [vmem:[%s690_s1] sm:$0x10]  ;;  %vm214_vm0 = vcmask 130048  }
   0xc   : > { %s563_s21 = sshll.u32 %s695_s16, 3  ;;  %v500_v2 = vld [vmem:[%s690_s1 + $0x8] sm:$0xf]  ;;  %v570_v3 = vld [vmem:[%s690_s1 + $0x8] sm:$0x10]  ;;  %v490_v5 = vor.u32 %v566_v1, %v489_v0  ;;  %v569_v11 = vld [vmem:[%s691_s2 + $0x10] sm:$0xff] }
   0xd   : > { %s192_s28 = scalar_lea.vmem %s689_s0, %s563_s21  ;;  %v501_v6 = vor.u32 %v570_v3, %v500_v2  ;;  %v539_v7 = vld [vmem:[%s690_s1 + $0x10] sm:$0xf]  ;;  %v574_v8 = vld [vmem:[%s690_s1 + $0x10] sm:$0x10]  ;;  %v573_v10 = vld [vmem:[%s691_s2 + $0x28] sm:$0xff]  ;;  %334 = vmatpush.bf16.msra.mxu3 %v569_v11  ;;  %vm290_vm1 = vcmask 392192  }
   0xe   : > { %v565_v4 = vld [vmem:[%s192_s28] sm:$0xff]  ;;  %v540_v9 = vor.u32 %v574_v8, %v539_v7  ;;  %299 = vmatpush.bf16.msra.mxu2 %v573_v10  ;;  %v568_v13 = vld [vmem:[%s691_s2 + $0x8] sm:$0xff]  ;;  %v571_v14 = vld [vmem:[%s691_s2 + $0x18] sm:$0xff]  ;;  %s564_s27 = sshll.u32 %s695_s16, 4  ;;  %vm419_vm2 = vcmask 220160   ;;  %vm421_vm3 = vcmask 212992  }
   0xf   : > { %225 = vmatpush.bf16.msra.mxu0 %v565_v4  ;;  %257 = vmatpush.bf16.msra.mxu1 %v565_v4  ;;  %v572_v12 = vld [vmem:[%s691_s2 + $0x20] sm:$0xff]  ;;  %v576_v17 = vld [vmem:[%s691_s2 + $0x38] sm:$0xff]  ;;  %v575_v18 = vld [vmem:[%s691_s2 + $0x30] sm:$0xff]  ;;  %s197_s6 = scalar_lea.vmem %s693_s4, %s564_s27 }
  0x10   : > { %v567_v15 = vld [vmem:[%s691_s2] sm:$0xff] }
  0x11   : > { %335 = vmatpush.bf16.msra.mxu3 %v568_v13  ;;  %v577_v16 = vld [vmem:[%s691_s2 + $0x40] sm:$0xff] }
  0x12   : > { %495 = vmatmul.msk.bf16.vlgmr.msra.gmra.mxu0 %vm214_vm0, %v490_v5  ;;  %502 = vmatmul.msk.bf16.vlgmr.msra.gmra.mxu1 %vm214_vm0, %v501_v6  ;;  %v586_v31 = vld [vmem:[%s692_s3] ss:$0 sm:$0xff] }
  0x13   : > { %361 = vmatpush.bf16.msrb.mxu0 %v565_v4  ;;  %300 = vmatpush.bf16.msra.mxu2 %v572_v12 }
  0x14   : > { %402 = vmatpush.bf16.msrb.mxu1 %v577_v16 }
  0x15   : > { %336 = vmatpush.bf16.msra.mxu3 %v567_v15 }
  0x17   : > { %301 = vmatpush.bf16.msra.mxu2 %v571_v14 }
  0x18   : > { %403 = vmatpush.bf16.msrb.mxu1 %v576_v17 }
  0x1c   : > { %404 = vmatpush.bf16.msrb.mxu1 %v575_v18 }
  0x22   : > { %541 = vmatmul.msk.bf16.vlgmr.msrb.gmra.mxu0 %vm214_vm0, %v540_v9 }
  0x8f   : > { %v227_v19 = vpop.f32.mrf.mxu0  ;;  %v259_v20 = vpop.f32.mrf.mxu1 }
  0x97   : > { %v229_v21 = vpop.f32.mrf.mxu0  ;;  %v261_v22 = vpop.f32.mrf.mxu1 }
  0x98   : > { %v232_v23 = vpack.c.bf16 %v229_v21, %v227_v19  ;;  %v264_v24 = vpack.c.bf16 %v261_v22, %v259_v20 }
  0x9a   : > { %521 = vmatmul.msk.bf16.vlgmr.msra.gmra.mxu2 %vm290_vm1, %v264_v24  ;;  %534 = vmatmul.msk.bf16.vlgmr.msra.gmra.mxu3 %vm290_vm1, %v232_v23 }
  0x9f   : > { %v363_v25 = vpop.f32.mrf.mxu0 }
  0xa7   : > { %v365_v26 = vpop.f32.mrf.mxu0 }
  0xa8   : > { %v368_v27 = vpack.c.bf16 %v365_v26, %v363_v25 }
  0xaa   : > { %560 = vmatmul.msk.bf16.vlgmr.msrb.gmra.mxu1 %vm290_vm1, %v368_v27 }
 0x11d   : > { %v303_v28 = vpop.f32.mrf.mxu2  ;;  %v338_v29 = vpop.f32.mrf.mxu3 }
 0x11e   : > { %v339_v30 = vadd.f32 %v338_v29, %v303_v28 }
 0x125   : > { %v305_v35 = vpop.f32.mrf.mxu2  ;;  %v340_v36 = vpop.f32.mrf.mxu3 }
 0x126   : > { %v341_v37 = vadd.f32 %v340_v36, %v305_v35 }
 0x127   : > { %v406_v32 = vpop.f32.mrf.mxu1 }
 0x128   : > { %v411_v33 = vadd.f32 %v406_v32, %v339_v30 }
 0x12a   : > { %v417_v34 = vadd.f32 %v586_v31, %v411_v33 }
 0x12c   : > { %420 = vst.msk [vmem:[%s197_s6] sm:$0xff] %vm419_vm2, %v417_v34 }
 0x12f   : > { %v408_v38 = vpop.f32.mrf.mxu1 }
 0x130   : > { %v412_v39 = vadd.f32 %v408_v38, %v341_v37 }
 0x132   : > { %v418_v40 = vadd.f32 %v586_v31, %v412_v39 }
 0x134   : > { %422 = vst.msk [vmem:[%s197_s6 + $0x8] sm:$0x1] %vm421_vm3, %v418_v40 }
 0x135 PF: > { %s14_s15 = sadd.s32 1, %s593_s15  }
 0x136   : > { %p11_p4 = scmp.ge.s32.totalorder %s14_s15, 4  }
 0x138   :  { %13 = sbr.rel (!%p11_p4) target bundleno = 1 (0x1), region = 70 }

</bundles_post_ra>
